<compile_context>
chip_gen: v7x
topology: tpu7x:2x2x1
jax: 0.10.0
libtpu: 0.0.40
codegen_flags: <defaults>
</compile_context>

<pallas_src>
import jax
import jax.numpy as jnp
from jax.experimental import pallas as pl
from jax.experimental.pallas import tpu as pltpu

# Small shapes consistent with the module's forward (noise: (n_samples, z_dim)).
BATCH = 8
Z_DIM = 16
HIDDEN = 32
IM_DIM = 64
OUT_PAD = 128                         # lane-padded head / output width
EPS = 1e-5

LAYER_DIMS = (HIDDEN, 2 * HIDDEN, 4 * HIDDEN, 8 * HIDDEN)   # per-block output widths
VEC_PAD = 8 * HIDDEN                  # 256: packed-vector row width
N_VEC_ROWS = 2 * len(LAYER_DIMS)      # 8: gamma/beta per layer; b5 hides in row 0


def generator_kernel(noise_ref, vecs_ref, w1, w2, w3, w4, w5, out_ref):
    h = noise_ref[...]                               # (BATCH, Z_DIM) bf16 (pre-cast)
    weight_refs = (w1, w2, w3, w4)
    for li, dout in enumerate(LAYER_DIMS):
        # Linear (bias omitted: exactly cancelled by train-mode BatchNorm mean sub).
        y = jnp.dot(h, weight_refs[li][...],
                    preferred_element_type=jnp.float32)         # (BATCH, dout) f32
        # BatchNorm1d train-mode stats over the batch axis: two independent
        # reductions; biased variance via E[y^2] - m^2 (clamped for safety).
        m = jnp.mean(y, axis=0, keepdims=True)
        q = jnp.mean(y * y, axis=0, keepdims=True)
        var = jnp.maximum(q - m * m, 0.0)
        g = vecs_ref[2 * li:2 * li + 1, :dout]                   # (1, dout) via ref slice
        beta = vecs_ref[2 * li + 1:2 * li + 2, :dout]            # (1, dout)
        s = g * jax.lax.rsqrt(var + EPS)                         # folded scale (EUP)
        h = jnp.maximum(y * s + (beta - m * s), 0.0)             # folded shift + ReLU
        h = h.astype(jnp.bfloat16)                               # bf16 for next MXU op
    # Final Linear (lane-padded to 128) + exact sigmoid.
    b5 = vecs_ref[0:1, VEC_PAD - OUT_PAD:]                       # (1, 128) padded bias
    logits = jnp.dot(h, w5[...], preferred_element_type=jnp.float32) + b5
    out_ref[...] = 1.0 / (1.0 + jnp.exp(-logits))


def generator_forward(noise, weights, vecs):
    n = noise.shape[0]
    inputs = (noise.astype(jnp.bfloat16), vecs, *weights)
    vmem = pltpu.MemorySpace.VMEM
    out = pl.pallas_call(
        generator_kernel,
        out_shape=jax.ShapeDtypeStruct((n, OUT_PAD), jnp.float32),
        in_specs=[pl.BlockSpec(memory_space=vmem) for _ in inputs],
        out_specs=pl.BlockSpec(memory_space=vmem),
    )(*inputs)
    return out[:, :IM_DIM]


def init_params(key):
    """Synthetic params with the shapes of Generator(z_dim=16, im_dim=64, hidden_dim=32)."""
    keys = jax.random.split(key, 4 * len(LAYER_DIMS) + 2)
    ki = 0
    blocks = []
    in_dims = (Z_DIM,) + LAYER_DIMS[:-1]
    for din, dout in zip(in_dims, LAYER_DIMS):
        w = 0.05 * jax.random.normal(keys[ki], (din, dout), jnp.float32); ki += 1
        b = 0.05 * jax.random.normal(keys[ki], (dout,), jnp.float32); ki += 1
        g = 1.0 + 0.1 * jax.random.normal(keys[ki], (dout,), jnp.float32); ki += 1
        be = 0.1 * jax.random.normal(keys[ki], (dout,), jnp.float32); ki += 1
        # Weights stored in bf16: MXU-native, halves weight DMA bytes.
        blocks.append((w.astype(jnp.bfloat16), b, g, be))
    w5 = (0.05 * jax.random.normal(keys[ki], (8 * HIDDEN, IM_DIM), jnp.float32)
          ).astype(jnp.bfloat16); ki += 1
    b5 = 0.05 * jax.random.normal(keys[ki], (IM_DIM,), jnp.float32)
    return blocks, (w5, b5)


def pack_kernel_inputs(blocks, head):
    """Pack gamma/beta (x4) + padded final bias into one (8, 256) f32 operand;
    zero-pad the head weight to 128 lanes; collect the 5 bf16 weights."""
    w5, b5 = head
    w5_pad = jnp.zeros((8 * HIDDEN, OUT_PAD), jnp.bfloat16).at[:, :IM_DIM].set(w5)
    weights = [w for (w, _, _, _) in blocks] + [w5_pad]
    vecs = jnp.zeros((N_VEC_ROWS, VEC_PAD), jnp.float32)
    for i, (_, _, g, be) in enumerate(blocks):
        vecs = vecs.at[2 * i, :g.shape[0]].set(g)
        vecs = vecs.at[2 * i + 1, :be.shape[0]].set(be)
    # Padded final bias in the unused lanes 128:256 of row 0 (row 0 uses lanes 0:32).
    vecs = vecs.at[0, VEC_PAD - OUT_PAD: VEC_PAD - OUT_PAD + b5.shape[0]].set(b5)
    return weights, vecs


def reference_forward(noise, blocks, head):
    """Pure-JAX, f32, module-faithful reference. The Linear biases b1..b4 ARE applied
    here (as in the PyTorch module); train-mode BatchNorm cancels them, which the
    kernel exploits by not loading them at all."""
    h = noise
    for w, b, g, be in blocks:
        y = h @ w.astype(jnp.float32) + b
        mean = jnp.mean(y, axis=0, keepdims=True)
        var = jnp.mean((y - mean) ** 2, axis=0, keepdims=True)
        y = (y - mean) / jnp.sqrt(var + EPS) * g + be
        h = jnp.maximum(y, 0.0)
    w5, b5 = head
    return jax.nn.sigmoid(h @ w5.astype(jnp.float32) + b5)


if __name__ == "__main__":
    root = jax.random.PRNGKey(0)
    k_noise, k_params = jax.random.split(root)
    noise = jax.random.normal(k_noise, (BATCH, Z_DIM), jnp.float32)
    blocks, head = init_params(k_params)
    weights, vecs = pack_kernel_inputs(blocks, head)

    out = generator_forward(noise, weights, vecs)
    jax.block_until_ready(out)

    ref = reference_forward(noise, blocks, head)
    assert out.shape == (BATCH, IM_DIM)
    # Tolerance covers bf16 rounding of the MXU inputs / activations; BN statistics
    # and all element-wise math are f32 in both paths, and the sigmoid is exact.
    assert jnp.allclose(out, ref, rtol=1e-2, atol=1e-2), float(jnp.max(jnp.abs(out - ref)))

    print("KERNEL_OK")
</pallas_src>

<mosaic_0001>
module attributes {stable_mosaic.version = 11 : i64} {
  func.func @generator_kernel(%arg0: memref<8x16xbf16, #tpu.memory_space<vmem>>, %arg1: memref<8x256xf32, #tpu.memory_space<vmem>>, %arg2: memref<16x32xbf16, #tpu.memory_space<vmem>>, %arg3: memref<32x64xbf16, #tpu.memory_space<vmem>>, %arg4: memref<64x128xbf16, #tpu.memory_space<vmem>>, %arg5: memref<128x256xbf16, #tpu.memory_space<vmem>>, %arg6: memref<256x128xbf16, #tpu.memory_space<vmem>>, %arg7: memref<8x128xf32, #tpu.memory_space<vmem>>) attributes {dimension_semantics = [], scalar_prefetch = 0 : i64, scratch_operands = 0 : i64, tpu.core_type = #tpu.core_type<tc>} {
    %c0 = arith.constant 0 : index
    %c0_0 = arith.constant 0 : index
    %0 = vector.load %arg0[%c0, %c0_0] : memref<8x16xbf16, #tpu.memory_space<vmem>>, vector<8x16xbf16>
    %c0_1 = arith.constant 0 : index
    %c0_2 = arith.constant 0 : index
    %1 = vector.load %arg2[%c0_1, %c0_2] : memref<16x32xbf16, #tpu.memory_space<vmem>>, vector<16x32xbf16>
    %cst = arith.constant dense<0.000000e+00> : vector<8x32xf32>
    %2 = tpu.matmul %0, %1, %cst {dimension_numbers = #tpu.dot_dimension_numbers<[1], [0], [0], [1], [0, 0, 1, 1], [], []>} : vector<8x16xbf16>, vector<16x32xbf16>, vector<8x32xf32> -> vector<8x32xf32>
    %cst_3 = arith.constant dense<0.000000e+00> : vector<32xf32>
    %3 = vector.multi_reduction <add>, %2, %cst_3 [0] : vector<8x32xf32> to vector<32xf32>
    %4 = vector.shape_cast %3 : vector<32xf32> to vector<1x32xf32>
    %cst_4 = arith.constant 8.000000e+00 : f32
    %5 = vector.broadcast %cst_4 : f32 to vector<1x32xf32>
    %6 = arith.divf %4, %5 : vector<1x32xf32>
    %7 = arith.mulf %2, %2 : vector<8x32xf32>
    %cst_5 = arith.constant dense<0.000000e+00> : vector<32xf32>
    %8 = vector.multi_reduction <add>, %7, %cst_5 [0] : vector<8x32xf32> to vector<32xf32>
    %9 = vector.shape_cast %8 : vector<32xf32> to vector<1x32xf32>
    %cst_6 = arith.constant 8.000000e+00 : f32
    %10 = vector.broadcast %cst_6 : f32 to vector<1x32xf32>
    %11 = arith.divf %9, %10 : vector<1x32xf32>
    %12 = arith.mulf %6, %6 : vector<1x32xf32>
    %13 = arith.subf %11, %12 : vector<1x32xf32>
    %cst_7 = arith.constant 0.000000e+00 : f32
    %14 = vector.broadcast %cst_7 : f32 to vector<1x32xf32>
    %15 = arith.maximumf %13, %14 : vector<1x32xf32>
    %c0_8 = arith.constant 0 : index
    %c0_9 = arith.constant 0 : index
    %16 = vector.load %arg1[%c0_8, %c0_9] : memref<8x256xf32, #tpu.memory_space<vmem>>, vector<1x32xf32>
    %c1 = arith.constant 1 : index
    %c0_10 = arith.constant 0 : index
    %17 = vector.load %arg1[%c1, %c0_10] : memref<8x256xf32, #tpu.memory_space<vmem>>, vector<1x32xf32>
    %cst_11 = arith.constant 9.99999974E-6 : f32
    %18 = vector.broadcast %cst_11 : f32 to vector<1x32xf32>
    %19 = arith.addf %15, %18 : vector<1x32xf32>
    %20 = math.rsqrt %19 : vector<1x32xf32>
    %21 = arith.mulf %16, %20 : vector<1x32xf32>
    %22 = vector.broadcast %21 : vector<1x32xf32> to vector<8x32xf32>
    %23 = arith.mulf %2, %22 : vector<8x32xf32>
    %24 = arith.mulf %6, %21 : vector<1x32xf32>
    %25 = arith.subf %17, %24 : vector<1x32xf32>
    %26 = vector.broadcast %25 : vector<1x32xf32> to vector<8x32xf32>
    %27 = arith.addf %23, %26 : vector<8x32xf32>
    %cst_12 = arith.constant 0.000000e+00 : f32
    %28 = vector.broadcast %cst_12 : f32 to vector<8x32xf32>
    %29 = arith.maximumf %27, %28 : vector<8x32xf32>
    %30 = arith.truncf %29 : vector<8x32xf32> to vector<8x32xbf16>
    %c0_13 = arith.constant 0 : index
    %c0_14 = arith.constant 0 : index
    %31 = vector.load %arg3[%c0_13, %c0_14] : memref<32x64xbf16, #tpu.memory_space<vmem>>, vector<32x64xbf16>
    %cst_15 = arith.constant dense<0.000000e+00> : vector<8x64xf32>
    %32 = tpu.matmul %30, %31, %cst_15 {dimension_numbers = #tpu.dot_dimension_numbers<[1], [0], [0], [1], [0, 0, 1, 1], [], []>} : vector<8x32xbf16>, vector<32x64xbf16>, vector<8x64xf32> -> vector<8x64xf32>
    %cst_16 = arith.constant dense<0.000000e+00> : vector<64xf32>
    %33 = vector.multi_reduction <add>, %32, %cst_16 [0] : vector<8x64xf32> to vector<64xf32>
    %34 = vector.shape_cast %33 : vector<64xf32> to vector<1x64xf32>
    %cst_17 = arith.constant 8.000000e+00 : f32
    %35 = vector.broadcast %cst_17 : f32 to vector<1x64xf32>
    %36 = arith.divf %34, %35 : vector<1x64xf32>
    %37 = arith.mulf %32, %32 : vector<8x64xf32>
    %cst_18 = arith.constant dense<0.000000e+00> : vector<64xf32>
    %38 = vector.multi_reduction <add>, %37, %cst_18 [0] : vector<8x64xf32> to vector<64xf32>
    %39 = vector.shape_cast %38 : vector<64xf32> to vector<1x64xf32>
    %cst_19 = arith.constant 8.000000e+00 : f32
    %40 = vector.broadcast %cst_19 : f32 to vector<1x64xf32>
    %41 = arith.divf %39, %40 : vector<1x64xf32>
    %42 = arith.mulf %36, %36 : vector<1x64xf32>
    %43 = arith.subf %41, %42 : vector<1x64xf32>
    %cst_20 = arith.constant 0.000000e+00 : f32
    %44 = vector.broadcast %cst_20 : f32 to vector<1x64xf32>
    %45 = arith.maximumf %43, %44 : vector<1x64xf32>
    %c2 = arith.constant 2 : index
    %c0_21 = arith.constant 0 : index
    %46 = vector.load %arg1[%c2, %c0_21] : memref<8x256xf32, #tpu.memory_space<vmem>>, vector<1x64xf32>
    %c3 = arith.constant 3 : index
    %c0_22 = arith.constant 0 : index
    %47 = vector.load %arg1[%c3, %c0_22] : memref<8x256xf32, #tpu.memory_space<vmem>>, vector<1x64xf32>
    %cst_23 = arith.constant 9.99999974E-6 : f32
    %48 = vector.broadcast %cst_23 : f32 to vector<1x64xf32>
    %49 = arith.addf %45, %48 : vector<1x64xf32>
    %50 = math.rsqrt %49 : vector<1x64xf32>
    %51 = arith.mulf %46, %50 : vector<1x64xf32>
    %52 = vector.broadcast %51 : vector<1x64xf32> to vector<8x64xf32>
    %53 = arith.mulf %32, %52 : vector<8x64xf32>
    %54 = arith.mulf %36, %51 : vector<1x64xf32>
    %55 = arith.subf %47, %54 : vector<1x64xf32>
    %56 = vector.broadcast %55 : vector<1x64xf32> to vector<8x64xf32>
    %57 = arith.addf %53, %56 : vector<8x64xf32>
    %cst_24 = arith.constant 0.000000e+00 : f32
    %58 = vector.broadcast %cst_24 : f32 to vector<8x64xf32>
    %59 = arith.maximumf %57, %58 : vector<8x64xf32>
    %60 = arith.truncf %59 : vector<8x64xf32> to vector<8x64xbf16>
    %c0_25 = arith.constant 0 : index
    %c0_26 = arith.constant 0 : index
    %61 = vector.load %arg4[%c0_25, %c0_26] : memref<64x128xbf16, #tpu.memory_space<vmem>>, vector<64x128xbf16>
    %cst_27 = arith.constant dense<0.000000e+00> : vector<8x128xf32>
    %62 = tpu.matmul %60, %61, %cst_27 {dimension_numbers = #tpu.dot_dimension_numbers<[1], [0], [0], [1], [0, 0, 1, 1], [], []>} : vector<8x64xbf16>, vector<64x128xbf16>, vector<8x128xf32> -> vector<8x128xf32>
    %cst_28 = arith.constant dense<0.000000e+00> : vector<128xf32>
    %63 = vector.multi_reduction <add>, %62, %cst_28 [0] : vector<8x128xf32> to vector<128xf32>
    %64 = vector.shape_cast %63 : vector<128xf32> to vector<1x128xf32>
    %cst_29 = arith.constant 8.000000e+00 : f32
    %65 = vector.broadcast %cst_29 : f32 to vector<1x128xf32>
    %66 = arith.divf %64, %65 : vector<1x128xf32>
    %67 = arith.mulf %62, %62 : vector<8x128xf32>
    %cst_30 = arith.constant dense<0.000000e+00> : vector<128xf32>
    %68 = vector.multi_reduction <add>, %67, %cst_30 [0] : vector<8x128xf32> to vector<128xf32>
    %69 = vector.shape_cast %68 : vector<128xf32> to vector<1x128xf32>
    %cst_31 = arith.constant 8.000000e+00 : f32
    %70 = vector.broadcast %cst_31 : f32 to vector<1x128xf32>
    %71 = arith.divf %69, %70 : vector<1x128xf32>
    %72 = arith.mulf %66, %66 : vector<1x128xf32>
    %73 = arith.subf %71, %72 : vector<1x128xf32>
    %cst_32 = arith.constant 0.000000e+00 : f32
    %74 = vector.broadcast %cst_32 : f32 to vector<1x128xf32>
    %75 = arith.maximumf %73, %74 : vector<1x128xf32>
    %c4 = arith.constant 4 : index
    %c0_33 = arith.constant 0 : index
    %76 = vector.load %arg1[%c4, %c0_33] : memref<8x256xf32, #tpu.memory_space<vmem>>, vector<1x128xf32>
    %c5 = arith.constant 5 : index
    %c0_34 = arith.constant 0 : index
    %77 = vector.load %arg1[%c5, %c0_34] : memref<8x256xf32, #tpu.memory_space<vmem>>, vector<1x128xf32>
    %cst_35 = arith.constant 9.99999974E-6 : f32
    %78 = vector.broadcast %cst_35 : f32 to vector<1x128xf32>
    %79 = arith.addf %75, %78 : vector<1x128xf32>
    %80 = math.rsqrt %79 : vector<1x128xf32>
    %81 = arith.mulf %76, %80 : vector<1x128xf32>
    %82 = vector.broadcast %81 : vector<1x128xf32> to vector<8x128xf32>
    %83 = arith.mulf %62, %82 : vector<8x128xf32>
    %84 = arith.mulf %66, %81 : vector<1x128xf32>
    %85 = arith.subf %77, %84 : vector<1x128xf32>
    %86 = vector.broadcast %85 : vector<1x128xf32> to vector<8x128xf32>
    %87 = arith.addf %83, %86 : vector<8x128xf32>
    %cst_36 = arith.constant 0.000000e+00 : f32
    %88 = vector.broadcast %cst_36 : f32 to vector<8x128xf32>
    %89 = arith.maximumf %87, %88 : vector<8x128xf32>
    %90 = arith.truncf %89 : vector<8x128xf32> to vector<8x128xbf16>
    %c0_37 = arith.constant 0 : index
    %c0_38 = arith.constant 0 : index
    %91 = vector.load %arg5[%c0_37, %c0_38] : memref<128x256xbf16, #tpu.memory_space<vmem>>, vector<128x256xbf16>
    %cst_39 = arith.constant dense<0.000000e+00> : vector<8x256xf32>
    %92 = tpu.matmul %90, %91, %cst_39 {dimension_numbers = #tpu.dot_dimension_numbers<[1], [0], [0], [1], [0, 0, 1, 1], [], []>} : vector<8x128xbf16>, vector<128x256xbf16>, vector<8x256xf32> -> vector<8x256xf32>
    %cst_40 = arith.constant dense<0.000000e+00> : vector<256xf32>
    %93 = vector.multi_reduction <add>, %92, %cst_40 [0] : vector<8x256xf32> to vector<256xf32>
    %94 = vector.shape_cast %93 : vector<256xf32> to vector<1x256xf32>
    %cst_41 = arith.constant 8.000000e+00 : f32
    %95 = vector.broadcast %cst_41 : f32 to vector<1x256xf32>
    %96 = arith.divf %94, %95 : vector<1x256xf32>
    %97 = arith.mulf %92, %92 : vector<8x256xf32>
    %cst_42 = arith.constant dense<0.000000e+00> : vector<256xf32>
    %98 = vector.multi_reduction <add>, %97, %cst_42 [0] : vector<8x256xf32> to vector<256xf32>
    %99 = vector.shape_cast %98 : vector<256xf32> to vector<1x256xf32>
    %cst_43 = arith.constant 8.000000e+00 : f32
    %100 = vector.broadcast %cst_43 : f32 to vector<1x256xf32>
    %101 = arith.divf %99, %100 : vector<1x256xf32>
    %102 = arith.mulf %96, %96 : vector<1x256xf32>
    %103 = arith.subf %101, %102 : vector<1x256xf32>
    %cst_44 = arith.constant 0.000000e+00 : f32
    %104 = vector.broadcast %cst_44 : f32 to vector<1x256xf32>
    %105 = arith.maximumf %103, %104 : vector<1x256xf32>
    %c6 = arith.constant 6 : index
    %c0_45 = arith.constant 0 : index
    %106 = vector.load %arg1[%c6, %c0_45] : memref<8x256xf32, #tpu.memory_space<vmem>>, vector<1x256xf32>
    %c7 = arith.constant 7 : index
    %c0_46 = arith.constant 0 : index
    %107 = vector.load %arg1[%c7, %c0_46] : memref<8x256xf32, #tpu.memory_space<vmem>>, vector<1x256xf32>
    %cst_47 = arith.constant 9.99999974E-6 : f32
    %108 = vector.broadcast %cst_47 : f32 to vector<1x256xf32>
    %109 = arith.addf %105, %108 : vector<1x256xf32>
    %110 = math.rsqrt %109 : vector<1x256xf32>
    %111 = arith.mulf %106, %110 : vector<1x256xf32>
    %112 = vector.broadcast %111 : vector<1x256xf32> to vector<8x256xf32>
    %113 = arith.mulf %92, %112 : vector<8x256xf32>
    %114 = arith.mulf %96, %111 : vector<1x256xf32>
    %115 = arith.subf %107, %114 : vector<1x256xf32>
    %116 = vector.broadcast %115 : vector<1x256xf32> to vector<8x256xf32>
    %117 = arith.addf %113, %116 : vector<8x256xf32>
    %cst_48 = arith.constant 0.000000e+00 : f32
    %118 = vector.broadcast %cst_48 : f32 to vector<8x256xf32>
    %119 = arith.maximumf %117, %118 : vector<8x256xf32>
    %120 = arith.truncf %119 : vector<8x256xf32> to vector<8x256xbf16>
    %c0_49 = arith.constant 0 : index
    %c128 = arith.constant 128 : index
    %121 = vector.load %arg1[%c0_49, %c128] : memref<8x256xf32, #tpu.memory_space<vmem>>, vector<1x128xf32>
    %c0_50 = arith.constant 0 : index
    %c0_51 = arith.constant 0 : index
    %122 = vector.load %arg6[%c0_50, %c0_51] : memref<256x128xbf16, #tpu.memory_space<vmem>>, vector<256x128xbf16>
    %cst_52 = arith.constant dense<0.000000e+00> : vector<8x128xf32>
    %123 = tpu.matmul %120, %122, %cst_52 {dimension_numbers = #tpu.dot_dimension_numbers<[1], [0], [0], [1], [0, 0, 1, 1], [], []>} : vector<8x256xbf16>, vector<256x128xbf16>, vector<8x128xf32> -> vector<8x128xf32>
    %124 = vector.broadcast %121 : vector<1x128xf32> to vector<8x128xf32>
    %125 = arith.addf %123, %124 : vector<8x128xf32>
    %cst_53 = arith.constant 0.000000e+00 : f32
    %126 = vector.broadcast %cst_53 : f32 to vector<8x128xf32>
    %127 = arith.subf %126, %125 : vector<8x128xf32>
    %128 = math.exp %127 : vector<8x128xf32>
    %cst_54 = arith.constant 1.000000e+00 : f32
    %129 = vector.broadcast %cst_54 : f32 to vector<8x128xf32>
    %130 = arith.addf %129, %128 : vector<8x128xf32>
    %cst_55 = arith.constant 1.000000e+00 : f32
    %131 = vector.broadcast %cst_55 : f32 to vector<8x128xf32>
    %132 = arith.divf %131, %130 : vector<8x128xf32>
    %c0_56 = arith.constant 0 : index
    %c0_57 = arith.constant 0 : index
    %133 = vector.load %arg7[%c0_56, %c0_57] : memref<8x128xf32, #tpu.memory_space<vmem>>, vector<8x128xf32>
    tpu.vector_store %arg7[%c0_56, %c0_57], %132 {strides = array<i32>} : memref<8x128xf32, #tpu.memory_space<vmem>>, vector<8x128xf32>,
    return
  }
}

</mosaic_0001>

<bundles_post_ra>
// kernel: tpu_custom_call.1
= control target key start
LH: loop header
LB: loop body
LE: loop exit
PB: predicated region body
PF: predicated region fallthrough
CT: control target
= control target key end

     0   :  { %12 = vsyncpa [#allocation3], 0  ;;  %s1395_s0 = inlined_call_operand.hbm [shape: bf16[8,16], index: 0, kind: input, shape index: {}]   ;;  %s1396_s1 = inlined_call_operand.hbm [shape: f32[8,256], index: 1, kind: input, shape index: {}]   ;;  %s1397_s2 = inlined_call_operand.hbm [shape: bf16[16,32], index: 2, kind: input, shape index: {}]   ;;  %s1398_s3 = inlined_call_operand.hbm [shape: bf16[32,64], index: 3, kind: input, shape index: {}]   ;;  %s1399_s4 = inlined_call_operand.hbm [shape: bf16[64,128], index: 4, kind: input, shape index: {}]   ;;  %s1400_s5 = inlined_call_operand.hbm [shape: bf16[128,256], index: 5, kind: input, shape index: {}]   ;;  %s1401_s6 = inlined_call_operand.hbm [shape: bf16[256,128], index: 6, kind: input, shape index: {}]   ;;  %s1402_s7 = inlined_call_operand.hbm [shape: f32[8,128], index: 7, kind: output, shape index: {}]  }
   0x1   :  { %13 = vsyncpa [#allocation6], 0 }
   0x2   :  { %14 = vsyncpa [#allocation9], 0 }
   0x3   :  { %15 = vsyncpa [#allocation12], 0 }
   0x4   :  { %16 = vsyncpa [#allocation4], 0  ;;  %s1208_s24 = smov [#allocation5]   ;;  %s1022_s28 = scalar_lea.hbm %s1396_s1, 256 }
   0x5   :  { %s33_s25 = sshll.u32 %s1208_s24, 4  ;;  %p1023_p0 = scmp.ne.s32.totalorder %s1396_s1, %s1022_s28  ;;  %s34_s25 = int_to_ptr.vmem [resolvable:$true] %s33_s25 }
   0x6   :  { %p1026_p1 = scmp.lt.u32.totalorder %s1022_s28, %s1396_s1 }
   0x8   :  { %p1028_p2 = pnand %p1026_p1, %p1023_p0 }
   0xa   :  { %1031 = shalt.err (!%p1028_p2)
}
   0xb   :  { %s1032_s10 = scalar_lea.vmem %s34_s25, 256  ;;  %p1037_p4 = scmp.lt.s32.totalorder %s34_s25, %s34_s25 }
   0xc   :  { %p1033_p3 = scmp.ne.s32.totalorder %s34_s25, %s1032_s10  ;;  %p1038_p5 = scmp.lt.s32.totalorder %s1032_s10, %s1032_s10 }
   0xe   :  { %p1039_p6 = por %p1038_p5, %p1037_p4 }
  0x10   :  { %p1040_p7 = pnand %p1039_p6, %p1033_p3 }
  0x12   :  { %1043 = shalt.err (!%p1040_p7)
}
  0x13   :  { %36 = dma.hbm_to_vmem [thread:$0]  %s1396_s1, 256, %s34_s25, [#allocation6]  }
  0x14   :  { %s1209_s13 = smov [#allocation8]   ;;  %s1210_s15 = smov [#allocation11]  }
  0x15   :  { %s54_s14 = sshll.u32 %s1209_s13, 4  ;;  %s78_s16 = sshll.u32 %s1210_s15, 4  ;;  %s55_s14 = int_to_ptr.vmem [resolvable:$true] %s54_s14  ;;  %s79_s16 = int_to_ptr.vmem [resolvable:$true] %s78_s16 }
  0x16   :  { %s1044_s19 = scalar_lea.hbm %s1398_s3, 256 }
  0x17   :  { %p1045_p8 = scmp.ne.s32.totalorder %s1398_s3, %s1044_s19  ;;  %p1048_p9 = scmp.lt.u32.totalorder %s1044_s19, %s1398_s3 }
  0x19   :  { %p1050_p10 = pnand %p1048_p9, %p1045_p8 }
  0x1b   :  { %1053 = shalt.err (!%p1050_p10)
}
  0x1c   :  { %s1054_s1 = scalar_lea.vmem %s55_s14, 256  ;;  %p1059_p12 = scmp.lt.s32.totalorder %s55_s14, %s55_s14 }
  0x1d   :  { %p1055_p11 = scmp.ne.s32.totalorder %s55_s14, %s1054_s1  ;;  %p1060_p13 = scmp.lt.s32.totalorder %s1054_s1, %s1054_s1 }
  0x1f   :  { %p1061_p0 = por %p1060_p13, %p1059_p12 }
  0x21   :  { %p1062_p1 = pnand %p1061_p0, %p1055_p11 }
  0x23   :  { %1065 = shalt.err (!%p1062_p1)
}
  0x24   :  { %s1211_s24 = smov 64   ;;  %s1212_s25 = smov 4  }
  0x25   :  { %60 = dma.hbm_to_vmem [thread:$0]  %s1398_s3, 256, %s55_s14, [#allocation9], %s1211_s24, %s1211_s24, %s1212_s25  }
  0x26   :  { %s1066_s30 = scalar_lea.hbm %s1400_s5, 2048 }
  0x27   :  { %p1067_p2 = scmp.ne.s32.totalorder %s1400_s5, %s1066_s30  ;;  %p1070_p3 = scmp.lt.u32.totalorder %s1066_s30, %s1400_s5 }
  0x29   :  { %p1072_p4 = pnand %p1070_p3, %p1067_p2 }
  0x2b   :  { %1075 = shalt.err (!%p1072_p4)
}
  0x2c   :  { %s1076_s12 = scalar_lea.vmem %s79_s16, 2048  ;;  %p1081_p6 = scmp.lt.s32.totalorder %s79_s16, %s79_s16 }
  0x2d   :  { %p1077_p5 = scmp.ne.s32.totalorder %s79_s16, %s1076_s12  ;;  %p1082_p7 = scmp.lt.s32.totalorder %s1076_s12, %s1076_s12 }
  0x2f   :  { %p1083_p8 = por %p1082_p7, %p1081_p6 }
  0x31   :  { %p1084_p9 = pnand %p1083_p8, %p1077_p5 }
  0x33   :  { %1087 = shalt.err (!%p1084_p9)
}
  0x34   :  { %s1213_s3 = smov 128   ;;  %s1214_s13 = smov 8  }
  0x35   :  { %84 = dma.hbm_to_vmem [thread:$0]  %s1400_s5, 2048, %s79_s16, [#allocation12], %s1213_s3, %s1213_s3, %s1214_s13  }
  0x36   :  { %s1215_s17 = smov [#allocation2]   ;;  %s1216_s19 = smov [#allocation7]  }
  0x37   :  { %s23_s18 = sshll.u32 %s1215_s17, 4  ;;  %s42_s20 = sshll.u32 %s1216_s19, 4  ;;  %s24_s18 = int_to_ptr.vmem [resolvable:$true] %s23_s18  ;;  %s43_s20 = int_to_ptr.vmem [resolvable:$true] %s42_s20 }
  0x38   :  { %s1088_s23 = scalar_lea.hbm %s1395_s0, 64 }
  0x39   :  { %p1089_p10 = scmp.ne.s32.totalorder %s1395_s0, %s1088_s23  ;;  %p1092_p11 = scmp.lt.u32.totalorder %s1088_s23, %s1395_s0 }
  0x3b   :  { %p1094_p12 = pnand %p1092_p11, %p1089_p10 }
  0x3d   :  { %1097 = shalt.err (!%p1094_p12)
}
  0x3e   :  { %s1098_s5 = scalar_lea.vmem %s24_s18, 64  ;;  %p1103_p0 = scmp.lt.s32.totalorder %s24_s18, %s24_s18 }
  0x3f   :  { %p1099_p13 = scmp.ne.s32.totalorder %s24_s18, %s1098_s5  ;;  %p1104_p1 = scmp.lt.s32.totalorder %s1098_s5, %s1098_s5 }
  0x41   :  { %p1105_p2 = por %p1104_p1, %p1103_p0 }
  0x43   :  { %p1106_p3 = pnand %p1105_p2, %p1099_p13 }
  0x45   :  { %1109 = shalt.err (!%p1106_p3)
}
  0x46   :  { %26 = dma.hbm_to_vmem [thread:$0]  %s1395_s0, 64, %s24_s18, [#allocation3]  }
  0x47   :  { %s1110_s9 = scalar_lea.hbm %s1397_s2, 128 }
  0x48   :  { %p1111_p4 = scmp.ne.s32.totalorder %s1397_s2, %s1110_s9  ;;  %p1114_p5 = scmp.lt.u32.totalorder %s1110_s9, %s1397_s2 }
  0x4a   :  { %p1116_p6 = pnand %p1114_p5, %p1111_p4 }
  0x4c   :  { %1119 = shalt.err (!%p1116_p6)
}
  0x4d   :  { %s1120_s13 = scalar_lea.vmem %s43_s20, 128  ;;  %p1125_p8 = scmp.lt.s32.totalorder %s43_s20, %s43_s20 }
  0x4e   :  { %p1121_p7 = scmp.ne.s32.totalorder %s43_s20, %s1120_s13  ;;  %p1126_p9 = scmp.lt.s32.totalorder %s1120_s13, %s1120_s13 }
  0x50   :  { %p1127_p10 = por %p1126_p9, %p1125_p8 }
  0x52   :  { %p1128_p11 = pnand %p1127_p10, %p1121_p7 }
  0x54   :  { %1131 = shalt.err (!%p1128_p11)
}
  0x55   :  { %48 = dma.hbm_to_vmem [thread:$0]  %s1397_s2, 128, %s43_s20, [#allocation6], %s1211_s24, %s1211_s24, %s1212_s25  }
  0x56   :  { %s1217_s15 = smov [#allocation10]   ;;  %s1218_s18 = smov [#allocation13]  }
  0x57   :  { %s66_s17 = sshll.u32 %s1217_s15, 4  ;;  %s90_s19 = sshll.u32 %s1218_s18, 4  ;;  %s67_s17 = int_to_ptr.vmem [resolvable:$true] %s66_s17  ;;  %s91_s19 = int_to_ptr.vmem [resolvable:$true] %s90_s19 }
  0x58   :  { %s1132_s23 = scalar_lea.hbm %s1399_s4, 512 }
  0x59   :  { %p1133_p12 = scmp.ne.s32.totalorder %s1399_s4, %s1132_s23  ;;  %p1136_p13 = scmp.lt.u32.totalorder %s1132_s23, %s1399_s4 }
  0x5b   :  { %p1138_p0 = pnand %p1136_p13, %p1133_p12 }
  0x5d   :  { %1141 = shalt.err (!%p1138_p0)
}
  0x5e   :  { %s1142_s2 = scalar_lea.vmem %s67_s17, 512  ;;  %p1147_p2 = scmp.lt.s32.totalorder %s67_s17, %s67_s17 }
  0x5f   :  { %p1143_p1 = scmp.ne.s32.totalorder %s67_s17, %s1142_s2  ;;  %p1148_p3 = scmp.lt.s32.totalorder %s1142_s2, %s1142_s2 }
  0x61   :  { %p1149_p4 = por %p1148_p3, %p1147_p2 }
  0x63   :  { %p1150_p5 = pnand %p1149_p4, %p1143_p1 }
  0x65   :  { %1153 = shalt.err (!%p1150_p5)
}
  0x66   :  { %72 = dma.hbm_to_vmem [thread:$0]  %s1399_s4, 512, %s67_s17, [#allocation9], %s1211_s24, %s1211_s24, %s1212_s25  }
  0x67   :  { %s1154_s30 = scalar_lea.hbm %s1401_s6, 2048 }
  0x68   :  { %p1155_p6 = scmp.ne.s32.totalorder %s1401_s6, %s1154_s30  ;;  %p1158_p7 = scmp.lt.u32.totalorder %s1154_s30, %s1401_s6 }
  0x6a   :  { %p1160_p8 = pnand %p1158_p7, %p1155_p6 }
  0x6c   :  { %1163 = shalt.err (!%p1160_p8)
}
  0x6d   :  { %s1164_s12 = scalar_lea.vmem %s91_s19, 2048  ;;  %p1169_p10 = scmp.lt.s32.totalorder %s91_s19, %s91_s19 }
  0x6e   :  { %p1165_p9 = scmp.ne.s32.totalorder %s91_s19, %s1164_s12  ;;  %p1170_p11 = scmp.lt.s32.totalorder %s1164_s12, %s1164_s12 }
  0x70   :  { %p1171_p12 = por %p1170_p11, %p1169_p10 }
  0x72   :  { %p1172_p13 = pnand %p1171_p12, %p1165_p9 }
  0x74   :  { %1175 = shalt.err (!%p1172_p13)
}
  0x75   :  { %96 = dma.hbm_to_vmem [thread:$0]  %s1401_s6, 2048, %s91_s19, [#allocation12], %s1211_s24, %s1211_s24, %s1212_s25  }
  0x76   :  { %1198 = dma.done.wait [#allocation3], 64  }
  0x77   :  { %1199 = vsyncadd [#allocation3], 4294967232 }
  0x78   :  { %1200 = dma.done.wait [#allocation6], 384  }
  0x79   :  { %1201 = vsyncadd [#allocation6], 4294966912 }
  0x7a   :  { %1202 = dma.done.wait [#allocation9], 768  }
  0x7b   :  { %1203 = vsyncadd [#allocation9], 4294966528 }
  0x7c   :  { %1204 = dma.done.wait [#allocation12], 4096  }
  0x7d   :  { %1205 = vsyncadd [#allocation12], 4294963200  ;;  %v1219_v0 = vmov 0.0   ;;  %vm1220_vm0 = vmmov 0   ;;  %v961_v1 = vld [vmem:[#allocation7] sm:$0xff]   ;;  %vm128_vm1 = vcmask 130048  }
  0x7e   :  { %919 = vmatprep.subr.bf16.mxu1 %v1219_v0  ;;  %921 = vmatprep.mubr.msk.bf16.mxu1 %vm1220_vm0, %v1219_v0  ;;  %v119_v2 = vld [vmem:[#allocation2] sm:$0xf]  ;;  %v963_v4 = vld [vmem:[#allocation8 + $0x8] sm:$0xff]   ;;  %vm172_vm2 = vcmask 261120   ;;  %v964_v40 = vld [vmem:[#allocation10] sm:$0xff]   ;;  %vm264_vm3 = vcmask 523264  }
  0x7f   :  { %933 = vmatprep.subr.bf16.mxu0 %v1219_v0  ;;  %941 = vmatprep.mubr.msk.bf16.mxu0 %vm1220_vm0, %v1219_v0  ;;  %v962_v3 = vld [vmem:[#allocation8] sm:$0xff]   ;;  %v194_v30 = vld [vmem:[#allocation5] ss:$0 sm:$0xff]  ;;  %v195_v33 = vld [vmem:[#allocation5 + $0x1] ss:$0 sm:$0xff]  ;;  %s1223_s6 = smov [#allocation14]  }
  0x80   :  { %920 = vmatpush3.bf16.msra.mxu1 %v961_v1  ;;  %934 = vmatpush3.bf16.msra.mxu0 %v964_v40  ;;  %v965_v41 = vld [vmem:[#allocation10 + $0x8] sm:$0xff]   ;;  %v966_v42 = vld [vmem:[#allocation10 + $0x10] sm:$0xff]   ;;  %v967_v43 = vld [vmem:[#allocation10 + $0x18] sm:$0xff]   ;;  %s833_s24 = sshll.u32 %s1223_s6, 4  ;;  %s834_s24 = int_to_ptr.vmem [resolvable:$true] %s833_s24 }
  0x81   :  { %925 = vmatprep.subr.bf16.mxu1 %v1219_v0  ;;  %935 = vmatprep.subr.bf16.mxu0 %v1219_v0  ;;  %s1176_s25 = scalar_lea.vmem %s834_s24, 128  ;;  %p1181_p1 = scmp.lt.s32.totalorder %s834_s24, %s834_s24 }
  0x82   :  { %p1177_p0 = scmp.ne.s32.totalorder %s834_s24, %s1176_s25  ;;  %p1182_p2 = scmp.lt.s32.totalorder %s1176_s25, %s1176_s25 }
  0x83   :  { %922 = vmatmul.mubr.msk.bf16.vlgmr.msra.gmra.mrb[0].mxu1 %vm128_vm1, %v119_v2 }
  0x84   :  { %929 = vmatprep.mubr.msk.bf16.mxu1 %vm1220_vm0, %v1219_v0  ;;  %926 = vmatpush3.bf16.msra.mxu1 %v962_v3  ;;  %p1183_p3 = por %p1182_p2, %p1181_p1 }
  0x85   :  { %927 = vmatprep.subr.bf16.mxu1 %v1219_v0  ;;  %936 = vmatpush3.bf16.msra.mxu0 %v965_v41 }
  0x86   :  { %937 = vmatprep.subr.bf16.mxu0 %v1219_v0  ;;  %p1184_p4 = pnand %p1183_p3, %p1177_p0 }
  0x88   :  { %928 = vmatpush3.bf16.msra.mxu1 %v963_v4 }
  0x89   :  { %938 = vmatpush3.bf16.msra.mxu0 %v966_v42 }
  0x8a   :  { %939 = vmatprep.subr.bf16.mxu0 %v1219_v0 }
  0x8d   :  { %940 = vmatpush3.bf16.msra.mxu0 %v967_v43 }
 0x156   :  { %v166_v5 = vpop.f32.mrb[0].mxu1 }
 0x157   :  { %v173_v6 = vsel %vm172_vm2, %v166_v5, 0.0  ;;  %v182_v7 = vmul.f32 %v166_v5, %v166_v5  ;;  %v923_v8 = vpop.f32.mrb[1].mxu1 }
 0x158   :  { %v174_v9 = vrot.slane %v173_v6, 4  ;;  %v169_v10 = vpop.f32.mrb[2].mxu1  ;;  %v286_v8 = vld [vmem:[#allocation5 + $0x3] ss:$0 sm:$0xff] }
 0x159   :  { %v183_v11 = vsel %vm172_vm2, %v182_v7, 0.0  ;;  %v924_v12 = vpop.f32.mrb[3].mxu1 }
 0x15a   :  { %v175_v13 = vadd.f32 %v174_v9, %v173_v6  ;;  %v184_v14 = vrot.slane %v183_v11, 4 }
 0x15c   :  { %v176_v15 = vrot.slane %v175_v13, 2  ;;  %v185_v16 = vadd.f32 %v184_v14, %v183_v11 }
 0x15e   :  { %v177_v17 = vadd.f32 %v176_v15, %v175_v13  ;;  %v186_v18 = vrot.slane %v185_v16, 2  ;;  %v970_v15 = vld [vmem:[#allocation11 + $0x4] ss:$8 sps:$4 sm:$0xff]  }
 0x15f   :  { %496 = vmatprep.subr.bf16.mxu1 %v970_v15  ;;  %v1006_v15 = vld [vmem:[#allocation13 + $0x78] sm:$0xff]  }
 0x160   :  { %v178_v19 = vrot.slane %v177_v17, 1  ;;  %v187_v20 = vadd.f32 %v186_v18, %v185_v16  ;;  %v968_v16 = vld [vmem:[#allocation11] ss:$8 sps:$4 sm:$0xff]   ;;  %v971_v18 = vld [vmem:[#allocation11 + $0x10] ss:$8 sps:$4 sm:$0xff]  }
 0x162   :  { %v179_v21 = vadd.f32 %v178_v19, %v177_v17  ;;  %v188_v22 = vrot.slane %v187_v20, 1  ;;  %v973_v17 = vld [vmem:[#allocation11 + $0x14] ss:$8 sps:$4 sm:$0xff]   ;;  %v976_v19 = vld [vmem:[#allocation11 + $0x24] ss:$8 sps:$4 sm:$0xff]  }
 0x164   :  { %v181_v23 = vmul.f32 0.125, %v179_v21  ;;  %v189_v24 = vadd.f32 %v188_v22, %v187_v20  ;;  %v974_v20 = vld [vmem:[#allocation11 + $0x20] ss:$8 sps:$4 sm:$0xff]   ;;  %v979_v21 = vld [vmem:[#allocation11 + $0x34] ss:$8 sps:$4 sm:$0xff]  }
 0x165   :  { %v977_v22 = vld [vmem:[#allocation11 + $0x30] ss:$8 sps:$4 sm:$0xff]  }
 0x166   :  { %v190_v25 = vmul.f32 0.125, %v189_v24  ;;  %v191_v26 = vmul.f32 %v181_v23, %v181_v23  ;;  %v980_v24 = vld [vmem:[#allocation11 + $0x40] ss:$8 sps:$4 sm:$0xff]  }
 0x168   :  { %v192_v27 = vsub.f32 %v190_v25, %v191_v26  ;;  %v985_v25 = vld [vmem:[#allocation11 + $0x54] ss:$8 sps:$4 sm:$0xff]   ;;  %v983_v26 = vld [vmem:[#allocation11 + $0x50] ss:$8 sps:$4 sm:$0xff]  }
 0x16a   :  { %v193_v28 = vmax.f32 %v192_v27, 0.0  ;;  %v988_v27 = vld [vmem:[#allocation11 + $0x64] ss:$8 sps:$4 sm:$0xff]  }
 0x16c   :  { %v196_v29 = vadd.f32 1e-05, %v193_v28  ;;  %v986_v28 = vld [vmem:[#allocation11 + $0x60] ss:$8 sps:$4 sm:$0xff]  }
 0x16e   :  { %1008 = vrsqrt.f32 %v196_v29  ;;  %v989_v29 = vld [vmem:[#allocation11 + $0x70] ss:$8 sps:$4 sm:$0xff]  }
 0x178   :  { %v1009_v31 = vpop.eup %1008 }
 0x179   :  { %v198_v32 = vmul.f32 %v1009_v31, %v194_v30  ;;  %v991_v30 = vld [vmem:[#allocation11 + $0x74] ss:$8 sps:$4 sm:$0xff]   ;;  %v1221_v31 = vmov 0  }
 0x17b   :  { %v200_v34 = vmul.f32 %v198_v32, %v181_v23  ;;  %v199_v35 = vmul.f32 %v198_v32, %v166_v5  ;;  %v285_v5 = vld [vmem:[#allocation5 + $0x2] ss:$0 sm:$0xff]  ;;  %v982_v23 = vld [vmem:[#allocation11 + $0x44] ss:$8 sps:$4 sm:$0xff]  }
 0x17d   :  { %v201_v36 = vsub.f32 %v195_v33, %v200_v34 }
 0x17f   :  { %v202_v37 = vadd.f32 %v201_v36, %v199_v35 }
 0x181   :  { %v203_v38 = vmax.f32 %v202_v37, 0.0 }
 0x183   :  { %v204_v39 = vpack.c.bf16 %v203_v38, %v203_v38 }
 0x185   :  { %930 = vmatmul.mubr.msk.bf16.vlgmr.msra.gmra.mrb[4].mxu1 %vm172_vm2, %v204_v39 }
 0x186   :  { %497 = vmatpush1.bf16.msra.mxu1 %v968_v16  ;;  %528 = vmatprep.mubr.bf16.mxu1 %v1221_v31  ;;  %v1007_v16 = vld [vmem:[#allocation13 + $0x38] sm:$0xff]  }
 0x187   :  { %498 = vmatprep.subr.bf16.mxu1 %v973_v17 }
 0x18a   :  { %499 = vmatpush1.bf16.msra.mxu1 %v971_v18 }
 0x18b   :  { %500 = vmatprep.subr.bf16.mxu1 %v976_v19 }
 0x18e   :  { %501 = vmatpush1.bf16.msra.mxu1 %v974_v20 }
 0x18f   :  { %502 = vmatprep.subr.bf16.mxu1 %v979_v21 }
 0x192   :  { %503 = vmatpush1.bf16.msra.mxu1 %v977_v22 }
 0x193   :  { %504 = vmatprep.subr.bf16.mxu1 %v982_v23 }
 0x196   :  { %505 = vmatpush1.bf16.msra.mxu1 %v980_v24 }
 0x197   :  { %506 = vmatprep.subr.bf16.mxu1 %v985_v25 }
 0x19a   :  { %507 = vmatpush1.bf16.msra.mxu1 %v983_v26 }
 0x19b   :  { %508 = vmatprep.subr.bf16.mxu1 %v988_v27 }
 0x19e   :  { %509 = vmatpush1.bf16.msra.mxu1 %v986_v28 }
 0x19f   :  { %510 = vmatprep.subr.bf16.mxu1 %v991_v30 }
 0x1a2   :  { %511 = vmatpush1.bf16.msra.mxu1 %v989_v29 }
 0x258   :  { %v258_v44 = vpop.f32.mrb[4].mxu1 }
 0x259   :  { %v265_v45 = vsel %vm264_vm3, %v258_v44, 0.0  ;;  %v273_v46 = vmul.f32 %v258_v44, %v258_v44  ;;  %v931_v47 = vpop.f32.mrb[5].mxu1 }
 0x25a   :  { %v266_v48 = vrot.slane %v265_v45, 4  ;;  %v261_v49 = vpop.f32.mrb[6].mxu1 }
 0x25b   :  { %v274_v50 = vsel %vm264_vm3, %v273_v46, 0.0  ;;  %v932_v51 = vpop.f32.mrb[7].mxu1 }
 0x25c   :  { %v267_v52 = vadd.f32 %v266_v48, %v265_v45  ;;  %v275_v53 = vrot.slane %v274_v50, 4 }
 0x25e   :  { %v268_v54 = vrot.slane %v267_v52, 2  ;;  %v276_v55 = vadd.f32 %v275_v53, %v274_v50 }
 0x260   :  { %v269_v56 = vadd.f32 %v268_v54, %v267_v52  ;;  %v277_v57 = vrot.slane %v276_v55, 2 }
 0x262   :  { %v270_v58 = vrot.slane %v269_v56, 1  ;;  %v278_v59 = vadd.f32 %v277_v57, %v276_v55  ;;  %v389_v55 = vld [vmem:[#allocation5 + $0x4] ss:$0 sm:$0xff] }
 0x264   :  { %v271_v60 = vadd.f32 %v270_v58, %v269_v56  ;;  %v279_v61 = vrot.slane %v278_v59, 1  ;;  %v390_v58 = vld [vmem:[#allocation5 + $0x5] ss:$0 sm:$0xff] }
 0x266   :  { %v272_v62 = vmul.f32 0.125, %v271_v60  ;;  %v280_v63 = vadd.f32 %v279_v61, %v278_v59 }
 0x268   :  { %v281_v0 = vmul.f32 0.125, %v280_v63  ;;  %v282_v1 = vmul.f32 %v272_v62, %v272_v62 }
 0x26a   :  { %v283_v2 = vsub.f32 %v281_v0, %v282_v1  ;;  %v992_v1 = vld [vmem:[#allocation13 + $0x40] sm:$0xff]  }
 0x26b   :  { %897 = vmatprep.subr.bf16.mxu0 %v992_v1 }
 0x26c   :  { %v284_v3 = vmax.f32 %v283_v2, 0.0  ;;  %v993_v2 = vld [vmem:[#allocation13] sm:$0xff]  }
 0x26e   :  { %v287_v4 = vadd.f32 1e-05, %v284_v3  ;;  %v994_v3 = vld [vmem:[#allocation13 + $0x48] sm:$0xff]  }
 0x270   :  { %1010 = vrsqrt.f32 %v287_v4  ;;  %v995_v4 = vld [vmem:[#allocation13 + $0x8] sm:$0xff]  }
 0x27a   :  { %v1011_v6 = vpop.eup %1010 }
 0x27b   :  { %v289_v7 = vmul.f32 %v1011_v6, %v285_v5  ;;  %v996_v5 = vld [vmem:[#allocation13 + $0x50] sm:$0xff]  }
 0x27c   :  { %v997_v6 = vld [vmem:[#allocation13 + $0x10] sm:$0xff]  }
 0x27d   :  { %v291_v9 = vmul.f32 %v289_v7, %v272_v62  ;;  %v290_v10 = vmul.f32 %v289_v7, %v258_v44  ;;  %v998_v7 = vld [vmem:[#allocation13 + $0x58] sm:$0xff]  }
 0x27f   :  { %v292_v11 = vsub.f32 %v286_v8, %v291_v9  ;;  %v999_v8 = vld [vmem:[#allocation13 + $0x18] sm:$0xff]   ;;  %v1000_v9 = vld [vmem:[#allocation13 + $0x60] sm:$0xff]  }
 0x281   :  { %v293_v12 = vadd.f32 %v292_v11, %v290_v10  ;;  %v1001_v10 = vld [vmem:[#allocation13 + $0x20] sm:$0xff]   ;;  %v1002_v11 = vld [vmem:[#allocation13 + $0x68] sm:$0xff]  }
 0x283   :  { %v294_v13 = vmax.f32 %v293_v12, 0.0  ;;  %v1003_v12 = vld [vmem:[#allocation13 + $0x28] sm:$0xff]  }
 0x285   :  { %v295_v14 = vpack.c.bf16 %v294_v13, %v294_v13  ;;  %v1004_v13 = vld [vmem:[#allocation13 + $0x70] sm:$0xff]  }
 0x287   :  { %942 = vmatmul.mubr.msk.bf16.vlgmr.msra.gmra.mrb[0].mxu0 %vm264_vm3, %v295_v14  ;;  %v1005_v14 = vld [vmem:[#allocation13 + $0x30] sm:$0xff]  }
 0x288   :  { %898 = vmatpush3.bf16.msra.mxu0 %v993_v2 }
 0x289   :  { %899 = vmatprep.subr.bf16.mxu0 %v994_v3 }
 0x28c   :  { %900 = vmatpush3.bf16.msra.mxu0 %v995_v4 }
 0x28d   :  { %901 = vmatprep.subr.bf16.mxu0 %v996_v5  ;;  %v574_v5 = vld [vmem:[#allocation5 + $0x6] ss:$8 sm:$0x3] }
 0x290   :  { %902 = vmatpush3.bf16.msra.mxu0 %v997_v6 }
 0x291   :  { %903 = vmatprep.subr.bf16.mxu0 %v998_v7 }
 0x294   :  { %904 = vmatpush3.bf16.msra.mxu0 %v999_v8 }
 0x295   :  { %905 = vmatprep.subr.bf16.mxu0 %v1000_v9 }
 0x298   :  { %906 = vmatpush3.bf16.msra.mxu0 %v1001_v10 }
 0x299   :  { %907 = vmatprep.subr.bf16.mxu0 %v1002_v11 }
 0x29c   :  { %908 = vmatpush3.bf16.msra.mxu0 %v1003_v12 }
 0x29d   :  { %909 = vmatprep.subr.bf16.mxu0 %v1004_v13 }
 0x2a0   :  { %910 = vmatpush3.bf16.msra.mxu0 %v1005_v14 }
 0x2a1   :  { %911 = vmatprep.subr.bf16.mxu0 %v1006_v15 }
 0x2a4   :  { %912 = vmatpush3.bf16.msra.mxu0 %v1007_v16 }
 0x35a   :  { %v365_v32 = vpop.f32.mrb[0].mxu0 }
 0x35b   :  { %v371_v33 = vrot.slane %v365_v32, 4  ;;  %v378_v34 = vmul.f32 %v365_v32, %v365_v32  ;;  %v943_v35 = vpop.f32.mrb[1].mxu0 }
 0x35c   :  { %v368_v36 = vpop.f32.mrb[2].mxu0 }
 0x35d   :  { %v372_v37 = vadd.f32 %v371_v33, %v365_v32  ;;  %v379_v38 = vrot.slane %v378_v34, 4  ;;  %v944_v39 = vpop.f32.mrb[3].mxu0 }
 0x35f   :  { %v373_v40 = vrot.slane %v372_v37, 2  ;;  %v380_v41 = vadd.f32 %v379_v38, %v378_v34 }
 0x361   :  { %v374_v42 = vadd.f32 %v373_v40, %v372_v37  ;;  %v381_v43 = vrot.slane %v380_v41, 2 }
 0x363   :  { %v375_v44 = vrot.slane %v374_v42, 1  ;;  %v382_v45 = vadd.f32 %v381_v43, %v380_v41 }
 0x365   :  { %v376_v46 = vadd.f32 %v375_v44, %v374_v42  ;;  %v383_v47 = vrot.slane %v382_v45, 1 }
 0x367   :  { %v377_v48 = vmul.f32 0.125, %v376_v46  ;;  %v384_v49 = vadd.f32 %v383_v47, %v382_v45 }
 0x369   :  { %v385_v50 = vmul.f32 0.125, %v384_v49  ;;  %v386_v51 = vmul.f32 %v377_v48, %v377_v48 }
 0x36b   :  { %v387_v52 = vsub.f32 %v385_v50, %v386_v51 }
 0x36d   :  { %v388_v53 = vmax.f32 %v387_v52, 0.0 }
 0x36f   :  { %v391_v54 = vadd.f32 1e-05, %v388_v53 }
 0x371   :  { %1012 = vrsqrt.f32 %v391_v54 }
 0x37b   :  { %v1013_v56 = vpop.eup %1012 }
 0x37c   :  { %v393_v57 = vmul.f32 %v1013_v56, %v389_v55 }
 0x37e   :  { %v395_v59 = vmul.f32 %v393_v57, %v377_v48  ;;  %v394_v60 = vmul.f32 %v393_v57, %v365_v32 }
 0x380   :  { %v396_v61 = vsub.f32 %v390_v58, %v395_v59  ;;  %v1222_v59 = vmov 1966171168  }
 0x382   :  { %v397_v62 = vadd.f32 %v396_v61, %v394_v60  ;;  %v585_v60 = vunpack.c.l.s4 %v1222_v59  ;;  %v587_v61 = vlaneseq }
 0x384   :  { %v398_v63 = vmax.f32 %v397_v62, 0.0  ;;  %v586_v62 = vunpack.c.0.s8 %v585_v60 }
 0x386   :  { %v399_v0 = vpack.c.bf16 %v398_v63, %v398_v63  ;;  %v588_v63 = vshrl.u32 %v587_v61, 7 }
 0x388   :  { %529 = vmatmul.mubr.bf16.vlgmr.msra.gmra.mrb[8].mxu1 %v399_v0  ;;  %v589_v1 = vsub.s32 %v586_v62, %v588_v63  ;;  %v603_v7 = vsub.s32 0, %v588_v63  ;;  %v607_v8 = vsub.s32 1, %v588_v63 }
 0x45b   :  { %v1376_v17 = vpop.f32.mrb[8].mxu1 }
 0x45c   :  { %v537_v18 = vrot.slane %v1376_v17, 4  ;;  %v551_v19 = vmul.f32 %v1376_v17, %v1376_v17  ;;  %v532_v20 = vpop.f32.mrb[9].mxu1 }
 0x45d   :  { %v543_v21 = vrot.slane %v532_v20, 4  ;;  %v552_v22 = vmul.f32 %v532_v20, %v532_v20  ;;  %v534_v23 = vpop.f32.mrb[10].mxu1 }
 0x45e   :  { %v538_v24 = vadd.f32 %v537_v18, %v1376_v17  ;;  %v553_v25 = vrot.slane %v551_v19, 4  ;;  %v535_v26 = vpop.f32.mrb[11].mxu1 }
 0x45f   :  { %v544_v27 = vadd.f32 %v543_v21, %v532_v20  ;;  %v559_v28 = vrot.slane %v552_v22, 4 }
 0x460   :  { %v539_v29 = vrot.slane %v538_v24, 2  ;;  %v554_v30 = vadd.f32 %v553_v25, %v551_v19  ;;  %v576_v19 = vld [vmem:[#allocation5 + $0x7] ss:$8 sm:$0x3] }
 0x461   :  { %v545_v31 = vrot.slane %v544_v27, 2  ;;  %v560_v32 = vadd.f32 %v559_v28, %v552_v22 }
 0x462   :  { %v540_v33 = vadd.f32 %v539_v29, %v538_v24  ;;  %v555_v34 = vrot.slane %v554_v30, 2 }
 0x463   :  { %v546_v35 = vadd.f32 %v545_v31, %v544_v27  ;;  %v561_v36 = vrot.slane %v560_v32, 2  ;;  %v651_v31 = vld [vmem:[#allocation5 + $0x8] ss:$0 sm:$0xff] }
 0x464   :  { %v541_v37 = vrot.slane %v540_v33, 1  ;;  %v556_v38 = vadd.f32 %v555_v34, %v554_v30 }
 0x465   :  { %v547_v39 = vrot.slane %v546_v35, 1  ;;  %v562_v40 = vadd.f32 %v561_v36, %v560_v32 }
 0x466   :  { %v542_v41 = vadd.f32 %v541_v37, %v540_v33  ;;  %v557_v42 = vrot.slane %v556_v38, 1 }
 0x467   :  { %v548_v43 = vadd.f32 %v547_v39, %v546_v35  ;;  %v563_v44 = vrot.slane %v562_v40, 1 }
 0x468   :  { %v549_v45 = vmul.f32 0.125, %v542_v41  ;;  %v558_v46 = vadd.f32 %v557_v42, %v556_v38 }
 0x469   :  { %v550_v47 = vmul.f32 0.125, %v548_v43  ;;  %v564_v48 = vadd.f32 %v563_v44, %v562_v40 }
 0x46a   :  { %v565_v49 = vmul.f32 0.125, %v558_v46  ;;  %v567_v50 = vmul.f32 %v549_v45, %v549_v45 }
 0x46b   :  { %v566_v51 = vmul.f32 0.125, %v564_v48  ;;  %v568_v52 = vmul.f32 %v550_v47, %v550_v47 }
 0x46c   :  { %v569_v53 = vsub.f32 %v565_v49, %v567_v50 }
 0x46d   :  { %v570_v54 = vsub.f32 %v566_v51, %v568_v52 }
 0x46e   :  { %v571_v55 = vmax.f32 %v569_v53, 0.0 }
 0x46f   :  { %v572_v56 = vmax.f32 %v570_v54, 0.0 }
 0x470   :  { %v577_v57 = vadd.f32 1e-05, %v571_v55 }
 0x471   :  { %v578_v58 = vadd.f32 1e-05, %v572_v56 }
 0x472   :  { %1014 = vrsqrt.f32 %v577_v57 }
 0x473   :  { %1016 = vrsqrt.f32 %v578_v58 }
 0x47c   :  { %v1015_v0 = vpop.eup %1014 }
 0x47d   :  { %v1017_v2 = vpop.eup %1016 }
 0x47e   :  { %v583_v3 = vcombine.low %v1015_v0, %v1017_v2 }
 0x480   :  { %v590_v4 = vrot.slane %v583_v3, %v589_v1 }
 0x482   :  { %v597_v6 = vrot.slane %v590_v4, %v589_v1 }
 0x484   :  { %v599_v9 = vmul.f32 %v597_v6, %v574_v5 }
 0x486   :  { %v604_v10 = vrot.slane %v599_v9, %v603_v7  ;;  %v608_v11 = vrot.slane %v599_v9, %v607_v8 }
 0x488   :  { %v612_v12 = vmul.f32 %v608_v11, %v532_v20  ;;  %v613_v13 = vmul.f32 %v604_v10, %v549_v45  ;;  %v614_v14 = vmul.f32 %v608_v11, %v550_v47  ;;  %v611_v15 = vmul.f32 %v604_v10, %v1376_v17 }
 0x48a   :  { %v617_v16 = vcombine.low %v613_v13, %v614_v14 }
 0x48c   :  { %v624_v18 = vrot.slane %v617_v16, %v589_v1 }
 0x48e   :  { %v631_v21 = vrot.slane %v624_v18, %v589_v1 }
 0x490   :  { %v633_v22 = vsub.f32 %v576_v19, %v631_v21 }
 0x492   :  { %v642_v23 = vrot.slane %v633_v22, %v607_v8  ;;  %v638_v24 = vrot.slane %v633_v22, %v603_v7 }
 0x494   :  { %v646_v25 = vadd.f32 %v642_v23, %v612_v12  ;;  %v645_v26 = vadd.f32 %v638_v24, %v611_v15 }
 0x496   :  { %v648_v27 = vmax.f32 %v646_v25, 0.0  ;;  %v647_v28 = vmax.f32 %v645_v26, 0.0 }
 0x498   :  { %v650_v29 = vpack.c.bf16 %v648_v27, %v648_v27  ;;  %v649_v30 = vpack.c.bf16 %v647_v28, %v647_v28 }
 0x49a   :  { %812 = vmatprep.mubr.bf16.mxu0 %v650_v29 }
 0x49b   :  { %813 = vmatmul.mubr.bf16.vlgmr.msra.gmra.mrb[4].mxu0 %v649_v30 }
 0x56e   :  { %v913_v20 = vpop.f32.mrb[4].mxu0 }
 0x56f   :  { %v914_v32 = vpop.f32.mrb[5].mxu0 }
 0x570   :  { %v915_v33 = vadd.f32 %v914_v32, %v913_v20  ;;  %v916_v17 = vpop.f32.mrb[6].mxu0 }
 0x571   :  { %v917_v34 = vpop.f32.mrb[7].mxu0 }
 0x572   :  { %v815_v35 = vadd.f32 %v915_v33, %v651_v31 }
 0x574   :  { %v820_v36 = vsub.f32 0.0, %v815_v35 }
 0x576   :  { %v821_v37 = vmul.f32 1.442695, %v820_v36 }
 0x578   :  { %1018 = vpow2.f32 %v821_v37 }
 0x582   :  { %v1019_v38 = vpop.eup %1018 }
 0x583   :  { %v823_v39 = vadd.f32 1.0, %v1019_v38 }
 0x585   :  { %1020 = vrcp.f32 %v823_v39 }
 0x58f   :  { %v1021_v40 = vpop.eup %1020 }
 0x590   :  { %826 = vst [vmem:[#allocation14] sm:$0xff] %v1021_v40 }
 0x591   :  { %1187 = shalt.err (!%p1184_p4)
}
 0x592   :  { %s1188_s14 = scalar_lea.hbm %s1402_s7, 128 }
 0x593   :  { %p1189_p5 = scmp.ne.s32.totalorder %s1402_s7, %s1188_s14  ;;  %p1192_p6 = scmp.lt.u32.totalorder %s1188_s14, %s1402_s7 }
 0x595   :  { %p1194_p7 = pnand %p1192_p6, %p1189_p5 }
 0x597   :  { %1197 = shalt.err (!%p1194_p7)
}
 0x598   :  { %836 = dma.vmem_to_hbm [thread:$0]  %s834_s24, 128, %s1402_s7, [#allocation4]  }
 0x599   :  { %1206 = dma.done.wait [#allocation4], 128  }
 0x59a   :  { %1207 = vsyncadd [#allocation4], 4294967168 }
 0x59b   :  { %840 = vsyncpa [#allocation3], 1 }
 0x59c   :  { %841 = vsyncpa [#allocation6], 1 }
 0x59d   :  { %842 = vsyncpa [#allocation9], 1 }
 0x59e   :  { %843 = vsyncpa [#allocation12], 1 }
 0x59f   :  { %844 = vsyncpa [#allocation4], 1 }

</bundles_post_ra>
